<compile_context>
chip_gen: v6e
topology: v6e:2x2x1
jax: 0.10.0
libtpu: 0.0.40
codegen_flags: <defaults>
</compile_context>

<pallas_src>
import functools
import math

import jax
import jax.numpy as jnp
from jax import lax
from jax.experimental import pallas as pl
from jax.experimental.pallas import tpu as pltpu


def _round_up(x, m):
    return ((x + m - 1) // m) * m


# ---------------------------------------------------------------------------
# Tiled linear kernel:  Y = X @ W + b      X:(M,K)  W:(K,N)  b:(1,N)
# ---------------------------------------------------------------------------
def _linear_kernel(x_ref, w_ref, b_ref, o_ref, *, mm_dtype):
    x = x_ref[...].astype(mm_dtype)
    w = w_ref[...].astype(mm_dtype)
    o_ref[...] = jnp.dot(x, w, preferred_element_type=jnp.float32) + b_ref[...]


def linear(x, w, b, *, mm_dtype=jnp.bfloat16, tm_max=512, tn_max=512):
    """x:(M,K) f32, w:(K,N) f32 ((in,out) layout), b:(N,) f32 -> (M,N) f32."""
    M, K = x.shape
    N = w.shape[1]

    tm = min(tm_max, _round_up(M, 8))
    tn = min(tn_max, _round_up(N, 128))
    Mp = _round_up(M, tm)
    Np = _round_up(N, tn)

    xp = x if Mp == M else jnp.pad(x, ((0, Mp - M), (0, 0)))
    wp = w if Np == N else jnp.pad(w, ((0, 0), (0, Np - N)))
    bp = (b if Np == N else jnp.pad(b, (0, Np - N))).reshape(1, Np)

    y = pl.pallas_call(
        functools.partial(_linear_kernel, mm_dtype=mm_dtype),
        out_shape=jax.ShapeDtypeStruct((Mp, Np), jnp.float32),
        grid_spec=pltpu.PrefetchScalarGridSpec(
            num_scalar_prefetch=0,
            grid=(Mp // tm, Np // tn),
            in_specs=[
                pl.BlockSpec((tm, K), lambda i, j: (i, 0)),
                pl.BlockSpec((K, tn), lambda i, j: (0, j)),
                pl.BlockSpec((1, tn), lambda i, j: (0, j)),
            ],
            out_specs=pl.BlockSpec((tm, tn), lambda i, j: (i, j)),
        ),
        compiler_params=pltpu.CompilerParams(
            dimension_semantics=("parallel", "parallel")
        ),
    )(xp, wp, bp)

    if Mp != M or Np != N:
        y = y[:M, :N]
    return y


# ---------------------------------------------------------------------------
# Fused attention + output-projection kernel.  One grid step per batch item:
#   for each head h:  softmax((q_h/sqrt(d_k)) k_h^T + bias) v_h @ Wo_h
#   accumulated into a lane-dense (S, n_units) output block, + bo once.
# ---------------------------------------------------------------------------
def _attn_kernel(*refs, n_heads, d_k, n_units, scale, causal, has_mask,
                 fused_qkv, mm_dtype):
    if fused_qkv:
        qkv_ref = refs[0]
        rest = refs[1:]
        s_k = qkv_ref.shape[0]
        read_q = lambda h: qkv_ref[:, pl.ds(h * d_k, d_k)]
        read_k = lambda h: qkv_ref[:, pl.ds(n_units + h * d_k, d_k)]
        read_v = lambda h: qkv_ref[:, pl.ds(2 * n_units + h * d_k, d_k)]
    else:
        q_ref, k_ref, v_ref = refs[0], refs[1], refs[2]
        rest = refs[3:]
        s_k = k_ref.shape[0]
        read_q = lambda h: q_ref[:, pl.ds(h * d_k, d_k)]
        read_k = lambda h: k_ref[:, pl.ds(h * d_k, d_k)]
        read_v = lambda h: v_ref[:, pl.ds(h * d_k, d_k)]

    wo_ref, bo_ref = rest[0], rest[1]
    mask_ref = rest[2] if has_mask else None
    o_ref = rest[-1]
    s_q = o_ref.shape[0]

    # Additive score bias, computed once per batch item and reused per head.
    if causal:
        row = lax.broadcasted_iota(jnp.int32, (s_q, s_k), 0)
        col = lax.broadcasted_iota(jnp.int32, (s_q, s_k), 1)
        bias = jnp.where(row >= col, jnp.float32(0.0), jnp.float32(-1e9))
    elif has_mask:
        m = mask_ref[0]                                   # (Sq, Sk) int8
        bias = jnp.where(m == 0, jnp.float32(-1e9), jnp.float32(0.0))
    else:
        bias = None

    acc = jnp.zeros((s_q, n_units), jnp.float32)
    for h in range(n_heads):
        q = (read_q(h) * scale).astype(mm_dtype)          # (Sq, d_k)
        k = read_k(h).astype(mm_dtype)                    # (Sk, d_k)
        v = read_v(h).astype(mm_dtype)                    # (Sk, d_k)

        # scores = (q / sqrt(d_k)) @ k^T, f32 accumulation on the MXU.
        s = lax.dot_general(q, k, (((1,), (1,)), ((), ())),
                            preferred_element_type=jnp.float32)   # (Sq, Sk)
        if bias is not None:
            s = s + bias

        # numerically-stable softmax over the key axis.
        s_max = jnp.max(s, axis=-1, keepdims=True)
        e = jnp.exp(s - s_max)
        denom = jnp.sum(e, axis=-1, keepdims=True)
        p = e * pl.reciprocal(denom, approx=True)
        # TODO(synk): train-mode dropout (p > 0) on attention probabilities
        #             not implemented (eval mode / identity).

        head = jnp.dot(p.astype(mm_dtype), v,
                       preferred_element_type=jnp.float32)        # (Sq, d_k)
        wo_h = wo_ref[pl.ds(h * d_k, d_k), :].astype(mm_dtype)    # (d_k, U)
        acc = acc + jnp.dot(head.astype(mm_dtype), wo_h,
                            preferred_element_type=jnp.float32)   # (Sq, U)

    o_ref[...] = acc + bo_ref[...]


def _attention_call(tensors, wo, bo, mask, *, B, Sq, Sk, n_heads, n_units,
                    causal, mm_dtype, fused_qkv):
    d_k = n_units // n_heads
    has_mask = (mask is not None) and (not causal)

    kernel = functools.partial(
        _attn_kernel, n_heads=n_heads, d_k=d_k, n_units=n_units,
        scale=1.0 / math.sqrt(d_k), causal=causal, has_mask=has_mask,
        fused_qkv=fused_qkv, mm_dtype=mm_dtype)

    if fused_qkv:
        in_specs = [pl.BlockSpec((Sq, 3 * n_units), lambda b: (b, 0))]
    else:
        in_specs = [
            pl.BlockSpec((Sq, n_units), lambda b: (b, 0)),
            pl.BlockSpec((Sk, n_units), lambda b: (b, 0)),
            pl.BlockSpec((Sk, n_units), lambda b: (b, 0)),
        ]
    args = list(tensors)

    in_specs += [
        pl.BlockSpec((n_units, n_units), lambda b: (0, 0)),
        pl.BlockSpec((1, n_units), lambda b: (0, 0)),
    ]
    args += [wo, bo.reshape(1, n_units)]

    if has_mask:
        in_specs.append(pl.BlockSpec((1, Sq, Sk), lambda b: (b, 0, 0)))
        args.append(mask.astype(jnp.int8))

    return pl.pallas_call(
        kernel,
        out_shape=jax.ShapeDtypeStruct((B * Sq, n_units), jnp.float32),
        grid_spec=pltpu.PrefetchScalarGridSpec(
            num_scalar_prefetch=0,
            grid=(B,),
            in_specs=in_specs,
            out_specs=pl.BlockSpec((Sq, n_units), lambda b: (b, 0)),
        ),
        compiler_params=pltpu.CompilerParams(
            dimension_semantics=("parallel",)
        ),
    )(*args)


# ---------------------------------------------------------------------------
# Full MultiHeadedAttention forward
# ---------------------------------------------------------------------------
def mha_forward(query, key, value, mask, params, n_heads, *,
                causal=False, self_attention=None, mm_dtype=jnp.bfloat16):
    """query:(B,Sq,U), key/value:(B,Sk,U) f32; mask:(B,Sq,Sk) (1 keep / 0 drop) or None.

    causal=True generates the lower-triangular mask in-kernel (mask is ignored).
    self_attention: True/False to force the fused-QKV path; None auto-detects
    via object identity (pass explicitly under jit if q/k/v are equal-but-
    distinct arrays).
    """
    B, Sq, U = query.shape
    Sk = key.shape[1]
    Mq = B * Sq
    if self_attention is None:
        self_attention = (query is key) and (key is value)

    if self_attention:
        # Fused QKV projection: one (Mq, 3U) matmul whose output feeds the
        # attention kernel directly (no column slices, no transposes).
        w_qkv = jnp.concatenate([params["wq"], params["wk"], params["wv"]], axis=1)
        b_qkv = jnp.concatenate([params["bq"], params["bk"], params["bv"]], axis=0)
        qkv = linear(query.reshape(Mq, U), w_qkv, b_qkv, mm_dtype=mm_dtype)
        tensors = (qkv,)
        fused = True
    else:
        q2d = linear(query.reshape(Mq, U), params["wq"], params["bq"], mm_dtype=mm_dtype)
        k2d = linear(key.reshape(B * Sk, U), params["wk"], params["bk"], mm_dtype=mm_dtype)
        v2d = linear(value.reshape(B * Sk, U), params["wv"], params["bv"], mm_dtype=mm_dtype)
        tensors = (q2d, k2d, v2d)
        fused = False

    out2d = _attention_call(
        tensors, params["wo"], params["bo"], mask,
        B=B, Sq=Sq, Sk=Sk, n_heads=n_heads, n_units=U,
        causal=causal, mm_dtype=mm_dtype, fused_qkv=fused)
    return out2d.reshape(B, Sq, U)


# ---------------------------------------------------------------------------
# Parameter init mirroring the PyTorch module (uniform(-k, k), k = sqrt(1/U)).
# Weights stored transposed, i.e. (in, out), so kernels compute x @ W + b.
# ---------------------------------------------------------------------------
def init_params(key, n_units):
    k = math.sqrt(1.0 / n_units)
    ks = jax.random.split(key, 8)
    u = lambda kk, shape: jax.random.uniform(kk, shape, jnp.float32, -k, k)
    return {
        "wq": u(ks[0], (n_units, n_units)), "bq": u(ks[1], (n_units,)),
        "wk": u(ks[2], (n_units, n_units)), "bk": u(ks[3], (n_units,)),
        "wv": u(ks[4], (n_units, n_units)), "bv": u(ks[5], (n_units,)),
        "wo": u(ks[6], (n_units, n_units)), "bo": u(ks[7], (n_units,)),
    }


# ---------------------------------------------------------------------------
# Pure-JAX f32 reference (mirrors the PyTorch forward with dropout == identity).
# ---------------------------------------------------------------------------
def reference_forward(query, key, value, mask, params, n_heads):
    B, S, U = query.shape
    d_k = U // n_heads

    def lin(x, w, b):
        return x @ w + b

    def heads(x):
        return x.reshape(B, -1, n_heads, d_k).transpose(0, 2, 1, 3)

    q = heads(lin(query, params["wq"], params["bq"]))
    k = heads(lin(key, params["wk"], params["bk"]))
    v = heads(lin(value, params["wv"], params["bv"]))
    scores = jnp.einsum("bhqd,bhkd->bhqk", q, k) / math.sqrt(d_k)
    if mask is not None:
        scores = jnp.where(mask[:, None, :, :] == 0, -1e9, scores)
    p = jax.nn.softmax(scores, axis=-1)
    attn = jnp.einsum("bhqk,bhkd->bhqd", p, v)
    concat = attn.transpose(0, 2, 1, 3).reshape(B, S, U)
    return lin(concat, params["wo"], params["bo"]).reshape(B, S, U)


if __name__ == "__main__":
    n_units, n_heads = 128, 4        # d_k = 32
    batch, seq = 2, 128

    key = jax.random.PRNGKey(0)
    kp, kq, kk, kv = jax.random.split(key, 4)
    params = init_params(kp, n_units)

    x_self = jax.random.normal(kq, (batch, seq, n_units), jnp.float32)
    key_in = jax.random.normal(kk, (batch, seq, n_units), jnp.float32)
    val_in = jax.random.normal(kv, (batch, seq, n_units), jnp.float32)
    causal_mask = jnp.broadcast_to(
        jnp.tril(jnp.ones((seq, seq), jnp.float32)), (batch, seq, seq))

    # bf16 MXU operands (f32 accumulation) vs. pure-f32 reference.
    TOL = 1e-1

    # 1) Self-attention (fused QKV), causal mask generated in-kernel (no mask DMA).
    out1 = jax.block_until_ready(
        mha_forward(x_self, x_self, x_self, None, params, n_heads, causal=True))
    ref1 = reference_forward(x_self, x_self, x_self, causal_mask, params, n_heads)
    assert out1.shape == (batch, seq, n_units)
    err1 = float(jnp.max(jnp.abs(out1 - ref1)))
    assert err1 < TOL, f"causal self-attention mismatch: max abs err {err1}"

    # 2) Self-attention with the same mask passed explicitly (int8 additive-bias path).
    out2 = jax.block_until_ready(
        mha_forward(x_self, x_self, x_self, causal_mask, params, n_heads))
    err2 = float(jnp.max(jnp.abs(out2 - ref1)))
    assert err2 < TOL, f"explicit-mask self-attention mismatch: max abs err {err2}"

    # 3) Cross-attention (separate projections), mask=None (nothing masked, no mask DMA).
    out3 = jax.block_until_ready(
        mha_forward(x_self, key_in, val_in, None, params, n_heads))
    ref3 = reference_forward(x_self, key_in, val_in, None, params, n_heads)
    assert out3.shape == (batch, seq, n_units)
    err3 = float(jnp.max(jnp.abs(out3 - ref3)))
    assert err3 < TOL, f"cross-attention mismatch: max abs err {err3}"

    print("KERNEL_OK")
</pallas_src>

<mosaic_0001>
module attributes {stable_mosaic.version = 11 : i64} {
  func.func @_linear_kernel(%arg0: i32, %arg1: i32, %arg2: memref<256x128xf32, #tpu.memory_space<vmem>>, %arg3: memref<128x384xf32, #tpu.memory_space<vmem>>, %arg4: memref<1x384xf32, #tpu.memory_space<vmem>>, %arg5: memref<256x384xf32, #tpu.memory_space<vmem>>) attributes {dimension_semantics = [#tpu.dimension_semantics<parallel>, #tpu.dimension_semantics<parallel>], iteration_bounds = array<i64: 1, 1>, scalar_prefetch = 0 : i64, scratch_operands = 0 : i64, tpu.core_type = #tpu.core_type<tc>, window_params = [{transform_indices = @transform_0, window_bounds = array<i64: 256, 128>}, {transform_indices = @transform_1, window_bounds = array<i64: 128, 384>}, {transform_indices = @transform_2, window_bounds = array<i64: 1, 384>}, {transform_indices = @transform_3, window_bounds = array<i64: 256, 384>}]} {
    %c0 = arith.constant 0 : index
    %c0_0 = arith.constant 0 : index
    %0 = vector.load %arg2[%c0, %c0_0] : memref<256x128xf32, #tpu.memory_space<vmem>>, vector<256x128xf32>
    %1 = arith.truncf %0 : vector<256x128xf32> to vector<256x128xbf16>
    %c0_1 = arith.constant 0 : index
    %c0_2 = arith.constant 0 : index
    %2 = vector.load %arg3[%c0_1, %c0_2] : memref<128x384xf32, #tpu.memory_space<vmem>>, vector<128x384xf32>
    %3 = arith.truncf %2 : vector<128x384xf32> to vector<128x384xbf16>
    %cst = arith.constant dense<0.000000e+00> : vector<256x384xf32>
    %4 = tpu.matmul %1, %3, %cst {dimension_numbers = #tpu.dot_dimension_numbers<[1], [0], [0], [1], [0, 0, 1, 1], [], []>} : vector<256x128xbf16>, vector<128x384xbf16>, vector<256x384xf32> -> vector<256x384xf32>
    %c0_3 = arith.constant 0 : index
    %c0_4 = arith.constant 0 : index
    %5 = vector.load %arg4[%c0_3, %c0_4] : memref<1x384xf32, #tpu.memory_space<vmem>>, vector<1x384xf32>
    %6 = vector.broadcast %5 : vector<1x384xf32> to vector<256x384xf32>
    %7 = arith.addf %4, %6 : vector<256x384xf32>
    %c0_5 = arith.constant 0 : index
    %c0_6 = arith.constant 0 : index
    %8 = vector.load %arg5[%c0_5, %c0_6] : memref<256x384xf32, #tpu.memory_space<vmem>>, vector<256x384xf32>
    tpu.vector_store %arg5[%c0_5, %c0_6], %7 {strides = array<i32>} : memref<256x384xf32, #tpu.memory_space<vmem>>, vector<256x384xf32>,
    return
  }
  func.func @transform_0(%arg0: i32, %arg1: i32) -> (i32, i32) {
    %c0_i32 = arith.constant 0 : i32
    %c0_i32_0 = arith.constant 0 : i32
    return %arg0, %c0_i32 : i32, i32
  }
  func.func @transform_1(%arg0: i32, %arg1: i32) -> (i32, i32) {
    %c0_i32 = arith.constant 0 : i32
    %c0_i32_0 = arith.constant 0 : i32
    return %c0_i32, %arg1 : i32, i32
  }
  func.func @transform_2(%arg0: i32, %arg1: i32) -> (i32, i32) {
    %c0_i32 = arith.constant 0 : i32
    %c0_i32_0 = arith.constant 0 : i32
    return %c0_i32, %arg1 : i32, i32
  }
  func.func @transform_3(%arg0: i32, %arg1: i32) -> (i32, i32) {
    %c0_i32 = arith.constant 0 : i32
    return %arg0, %arg1 : i32, i32
  }
}

</mosaic_0001>

<bundles_post_ra>
// kernel: tpu_custom_call.1
= control target key start
LH: loop header
LB: loop body
LE: loop exit
PB: predicated region body
PF: predicated region fallthrough
CT: control target
= control target key end

     0   :  { %8 = vsyncpa [#allocation3], 0  ;;  %s1005_s0 = inlined_call_operand.hbm [shape: f32[256,128], index: 0, kind: input, shape index: {}]   ;;  %s1006_s1 = inlined_call_operand.hbm [shape: f32[128,384], index: 1, kind: input, shape index: {}]   ;;  %s1007_s2 = inlined_call_operand.vmem [shape: f32[1,384], index: 2, kind: input, shape index: {}]   ;;  %s1008_s3 = inlined_call_operand.hbm [shape: f32[256,384], index: 3, kind: output, shape index: {}]  }
   0x1   :  { %9 = vsyncpa [#allocation6], 0 }
   0x2   :  { %10 = vsyncpa [#allocation4], 0  ;;  %s811_s12 = smov [#allocation2]  }
   0x3   :  { %s16_s13 = sshll.u32 %s811_s12, 4  ;;  %s17_s13 = int_to_ptr.vmem [resolvable:$true] %s16_s13 }
   0x4   :  { %s753_s14 = scalar_lea.vmem %s17_s13, 4096  ;;  %p758_p1 = scmp.lt.s32.totalorder %s17_s13, %s17_s13 }
   0x5   :  { %p754_p0 = scmp.ne.s32.totalorder %s17_s13, %s753_s14  ;;  %p759_p2 = scmp.lt.s32.totalorder %s753_s14, %s753_s14 }
   0x7   :  { %p760_p3 = por %p759_p2, %p758_p1 }
   0x9   :  { %p761_p4 = pnand %p760_p3, %p754_p0 }
   0xb   :  { %764 = shalt.err (!%p761_p4)
}
   0xc   :  { %s812_s15 = smov 128   ;;  %s813_s16 = smov 8  }
   0xd   :  { %22 = dma.hbm_to_vmem [thread:$0]  %s1005_s0, 4096, %s17_s13, [#allocation3], %s812_s15, %s812_s15, %s813_s16  }
   0xe   :  { %s814_s19 = smov [#allocation5]  }
   0xf   :  { %s28_s20 = sshll.u32 %s814_s19, 4  ;;  %s29_s20 = int_to_ptr.vmem [resolvable:$true] %s28_s20 }
  0x10   :  { %s773_s21 = scalar_lea.vmem %s29_s20, 6144  ;;  %p778_p6 = scmp.lt.s32.totalorder %s29_s20, %s29_s20 }
  0x11   :  { %p774_p5 = scmp.ne.s32.totalorder %s29_s20, %s773_s21  ;;  %p779_p7 = scmp.lt.s32.totalorder %s773_s21, %s773_s21 }
  0x13   :  { %p780_p8 = por %p779_p7, %p778_p6 }
  0x15   :  { %p781_p9 = pnand %p780_p8, %p774_p5 }
  0x17   :  { %784 = shalt.err (!%p781_p9)
}
  0x18   :  { %s815_s22 = smov 384   ;;  %s816_s23 = smov 24  }
  0x19   :  { %34 = dma.hbm_to_vmem [thread:$0]  %s1006_s1, 6144, %s29_s20, [#allocation6], %s815_s22, %s815_s22, %s816_s23  }
  0x1a   :  { %805 = dma.done.wait [#allocation3], 4096  }
  0x1b   :  { %806 = vsyncadd [#allocation3], 4294963200 }
  0x1c   :  { %807 = dma.done.wait [#allocation6], 6144  }
  0x1d   :  { %808 = vsyncadd [#allocation6], 4294961152  ;;  %v817_v0 = vmov 0   ;;  %v135_v1 = vld [vmem:[#allocation5 + $0x158] sm:$0xff]  ;;  %v138_v2 = vld [vmem:[#allocation5 + $0x170] sm:$0xff] }
  0x1e   :  { %213 = vmatprep.mubr.bf16.mxu0 %v817_v0  ;;  %333 = vmatprep.mubr.bf16.mxu1 %v817_v0  ;;  %v134_v3 = vld [vmem:[#allocation5 + $0x150] sm:$0xff]  ;;  %v162_v4 = vpack.c.bf16 %v138_v2, %v135_v1  ;;  %v137_v5 = vld [vmem:[#allocation5 + $0x168] sm:$0xff]  ;;  %v132_v7 = vld [vmem:[#allocation5 + $0x140] sm:$0xff] }
  0x1f   :  { %v129_v6 = vld [vmem:[#allocation5 + $0x128] sm:$0xff]  ;;  %v161_v8 = vpack.c.bf16 %v137_v5, %v134_v3  ;;  %v128_v10 = vld [vmem:[#allocation5 + $0x120] sm:$0xff]  ;;  %v131_v11 = vld [vmem:[#allocation5 + $0x138] sm:$0xff] }
  0x20   :  { %v159_v9 = vpack.c.bf16 %v132_v7, %v129_v6  ;;  %v123_v12 = vld [vmem:[#allocation5 + $0xf8] sm:$0xff]  ;;  %181 = vmatprep.subr.bf16.mxu0 %v162_v4  ;;  %721 = vmatprep.subr.bf16.mxu1 %v162_v4  ;;  %v126_v13 = vld [vmem:[#allocation5 + $0x110] sm:$0xff]  ;;  %v158_v14 = vpack.c.bf16 %v131_v11, %v128_v10  ;;  %v125_v17 = vld [vmem:[#allocation5 + $0x108] sm:$0xff] }
  0x21   :  { %182 = vmatpush1.bf16.msra.mxu0 %v161_v8  ;;  %729 = vmatpush1.bf16.msra.mxu1 %v161_v8  ;;  %v156_v15 = vpack.c.bf16 %v126_v13, %v123_v12  ;;  %v122_v16 = vld [vmem:[#allocation5 + $0xf0] sm:$0xff]  ;;  %v117_v18 = vld [vmem:[#allocation5 + $0xc8] sm:$0xff]  ;;  %v120_v19 = vld [vmem:[#allocation5 + $0xe0] sm:$0xff] }
  0x22   :  { %183 = vmatprep.subr.bf16.mxu0 %v159_v9  ;;  %722 = vmatprep.subr.bf16.mxu1 %v159_v9  ;;  %v155_v20 = vpack.c.bf16 %v125_v17, %v122_v16  ;;  %v153_v21 = vpack.c.bf16 %v120_v19, %v117_v18  ;;  %v116_v22 = vld [vmem:[#allocation5 + $0xc0] sm:$0xff]  ;;  %v119_v23 = vld [vmem:[#allocation5 + $0xd8] sm:$0xff]  ;;  %v114_v25 = vld [vmem:[#allocation5 + $0xb0] sm:$0xff] }
  0x23   :  { %v111_v24 = vld [vmem:[#allocation5 + $0x98] sm:$0xff]  ;;  %v152_v26 = vpack.c.bf16 %v119_v23, %v116_v22  ;;  %v110_v28 = vld [vmem:[#allocation5 + $0x90] sm:$0xff]  ;;  %v113_v29 = vld [vmem:[#allocation5 + $0xa8] sm:$0xff] }
  0x24   :  { %v150_v27 = vpack.c.bf16 %v114_v25, %v111_v24  ;;  %v105_v30 = vld [vmem:[#allocation5 + $0x68] sm:$0xff]  ;;  %v108_v31 = vld [vmem:[#allocation5 + $0x80] sm:$0xff]  ;;  %v149_v32 = vpack.c.bf16 %v113_v29, %v110_v28  ;;  %v107_v35 = vld [vmem:[#allocation5 + $0x78] sm:$0xff] }
  0x25   :  { %184 = vmatpush1.bf16.msra.mxu0 %v158_v14  ;;  %730 = vmatpush1.bf16.msra.mxu1 %v158_v14  ;;  %v147_v33 = vpack.c.bf16 %v108_v31, %v105_v30  ;;  %v104_v34 = vld [vmem:[#allocation5 + $0x60] sm:$0xff]  ;;  %v99_v36 = vld [vmem:[#allocation5 + $0x38] sm:$0xff]  ;;  %v102_v37 = vld [vmem:[#allocation5 + $0x50] sm:$0xff] }
  0x26   :  { %185 = vmatprep.subr.bf16.mxu0 %v156_v15  ;;  %723 = vmatprep.subr.bf16.mxu1 %v156_v15  ;;  %v146_v38 = vpack.c.bf16 %v107_v35, %v104_v34  ;;  %v144_v39 = vpack.c.bf16 %v102_v37, %v99_v36  ;;  %v98_v40 = vld [vmem:[#allocation5 + $0x30] sm:$0xff]  ;;  %v101_v41 = vld [vmem:[#allocation5 + $0x48] sm:$0xff]  ;;  %v96_v43 = vld [vmem:[#allocation5 + $0x20] sm:$0xff] }
  0x27   :  { %v93_v42 = vld [vmem:[#allocation5 + $0x8] sm:$0xff]  ;;  %v143_v44 = vpack.c.bf16 %v101_v41, %v98_v40  ;;  %v92_v46 = vld [vmem:[#allocation5] sm:$0xff]  ;;  %v95_v47 = vld [vmem:[#allocation5 + $0x18] sm:$0xff] }
  0x28   :  { %v141_v45 = vpack.c.bf16 %v96_v43, %v93_v42  ;;  %v136_v48 = vld [vmem:[#allocation5 + $0x160] sm:$0xff]  ;;  %v139_v49 = vld [vmem:[#allocation5 + $0x178] sm:$0xff]  ;;  %v140_v51 = vpack.c.bf16 %v95_v47, %v92_v46  ;;  %v45_v52 = vld [vmem:[#allocation2 + $0x8] sm:$0xff] }
  0x29   :  { %186 = vmatpush1.bf16.msra.mxu0 %v155_v20  ;;  %731 = vmatpush1.bf16.msra.mxu1 %v155_v20  ;;  %v44_v50 = vld [vmem:[#allocation2] sm:$0xff]  ;;  %v69_v54 = vld [vmem:[#allocation2 + $0xc8] sm:$0xff]  ;;  %v163_v55 = vpack.c.bf16 %v139_v49, %v136_v48  ;;  %v130_v56 = vld [vmem:[#allocation5 + $0x130] sm:$0xff] }
  0x2a   :  { %187 = vmatprep.subr.bf16.mxu0 %v153_v21  ;;  %724 = vmatprep.subr.bf16.mxu1 %v153_v21  ;;  %v68_v53 = vld [vmem:[#allocation2 + $0xc0] sm:$0xff]  ;;  %v133_v57 = vld [vmem:[#allocation5 + $0x148] sm:$0xff]  ;;  %v850_v58 = vpack.c.bf16 %v45_v52, %v44_v50  ;;  %v127_v62 = vld [vmem:[#allocation5 + $0x118] sm:$0xff] }
  0x2b   :  { %v852_v59 = vpack.c.bf16 %v69_v54, %v68_v53  ;;  %v160_v60 = vpack.c.bf16 %v133_v57, %v130_v56  ;;  %v124_v61 = vld [vmem:[#allocation5 + $0x100] sm:$0xff]  ;;  %v46_v63 = vld [vmem:[#allocation2 + $0x10] sm:$0xff]  ;;  %v47_v1 = vld [vmem:[#allocation2 + $0x18] sm:$0xff] }
  0x2c   :  { %v70_v2 = vld [vmem:[#allocation2 + $0xd0] sm:$0xff]  ;;  %v71_v3 = vld [vmem:[#allocation2 + $0xd8] sm:$0xff]  ;;  %v157_v4 = vpack.c.bf16 %v127_v62, %v124_v61  ;;  %v121_v6 = vld [vmem:[#allocation5 + $0xe8] sm:$0xff]  ;;  %v77_v7 = vpack.c.bf16 %v47_v1, %v46_v63 }
  0x2d   :  { %188 = vmatpush1.bf16.msra.mxu0 %v152_v26  ;;  %732 = vmatpush1.bf16.msra.mxu1 %v152_v26  ;;  %v118_v5 = vld [vmem:[#allocation5 + $0xd0] sm:$0xff]  ;;  %v858_v8 = vpack.c.bf16 %v71_v3, %v70_v2  ;;  %v112_v10 = vld [vmem:[#allocation5 + $0xa0] sm:$0xff]  ;;  %v115_v11 = vld [vmem:[#allocation5 + $0xb8] sm:$0xff] }
  0x2e   :  { %189 = vmatprep.subr.bf16.mxu0 %v150_v27  ;;  %725 = vmatprep.subr.bf16.mxu1 %v150_v27  ;;  %v154_v9 = vpack.c.bf16 %v121_v6, %v118_v5  ;;  %v48_v12 = vld [vmem:[#allocation2 + $0x20] sm:$0xff]  ;;  %v49_v13 = vld [vmem:[#allocation2 + $0x28] sm:$0xff]  ;;  %v151_v16 = vpack.c.bf16 %v115_v11, %v112_v10  ;;  %v106_v17 = vld [vmem:[#allocation5 + $0x70] sm:$0xff] }
  0x2f   :  { %v72_v14 = vld [vmem:[#allocation2 + $0xe0] sm:$0xff]  ;;  %v73_v15 = vld [vmem:[#allocation2 + $0xe8] sm:$0xff]  ;;  %v78_v19 = vpack.c.bf16 %v49_v13, %v48_v12  ;;  %v103_v23 = vld [vmem:[#allocation5 + $0x58] sm:$0xff] }
  0x30   :  { %v109_v18 = vld [vmem:[#allocation5 + $0x88] sm:$0xff]  ;;  %v863_v20 = vpack.c.bf16 %v73_v15, %v72_v14  ;;  %v100_v22 = vld [vmem:[#allocation5 + $0x40] sm:$0xff]  ;;  %v50_v24 = vld [vmem:[#allocation2 + $0x30] sm:$0xff] }
  0x31   :  { %190 = vmatpush1.bf16.msra.mxu0 %v149_v32  ;;  %733 = vmatpush1.bf16.msra.mxu1 %v149_v32  ;;  %v148_v21 = vpack.c.bf16 %v109_v18, %v106_v17  ;;  %v51_v25 = vld [vmem:[#allocation2 + $0x38] sm:$0xff]  ;;  %v74_v26 = vld [vmem:[#allocation2 + $0xf0] sm:$0xff]  ;;  %v145_v28 = vpack.c.bf16 %v103_v23, %v100_v22  ;;  %v97_v30 = vld [vmem:[#allocation5 + $0x28] sm:$0xff] }
  0x32   :  { %191 = vmatprep.subr.bf16.mxu0 %v147_v33  ;;  %726 = vmatprep.subr.bf16.mxu1 %v147_v33  ;;  %v75_v27 = vld [vmem:[#allocation2 + $0xf8] sm:$0xff]  ;;  %v94_v29 = vld [vmem:[#allocation5 + $0x10] sm:$0xff]  ;;  %v79_v31 = vpack.c.bf16 %v51_v25, %v50_v24  ;;  %v52_v34 = vld [vmem:[#allocation2 + $0x40] sm:$0xff] }
  0x33   :  { %v868_v32 = vpack.c.bf16 %v75_v27, %v74_v26  ;;  %v142_v33 = vpack.c.bf16 %v97_v30, %v94_v29  ;;  %v53_v35 = vld [vmem:[#allocation2 + $0x48] sm:$0xff]  ;;  %v54_v37 = vld [vmem:[#allocation2 + $0x50] sm:$0xff]  ;;  %v56_v40 = vld [vmem:[#allocation2 + $0x60] sm:$0xff] }
  0x34   :  { %v80_v36 = vpack.c.bf16 %v53_v35, %v52_v34  ;;  %v57_v41 = vld [vmem:[#allocation2 + $0x68] sm:$0xff]  ;;  %v58_v43 = vld [vmem:[#allocation2 + $0x70] sm:$0xff]  ;;  %v63_v50 = vld [vmem:[#allocation2 + $0x98] sm:$0xff] }
  0x35   :  { %192 = vmatpush1.bf16.msra.mxu0 %v146_v38  ;;  %734 = vmatpush1.bf16.msra.mxu1 %v146_v38  ;;  %v55_v38 = vld [vmem:[#allocation2 + $0x58] sm:$0xff]  ;;  %v82_v42 = vpack.c.bf16 %v57_v41, %v56_v40  ;;  %v61_v46 = vld [vmem:[#allocation2 + $0x88] sm:$0xff]  ;;  %v62_v49 = vld [vmem:[#allocation2 + $0x90] sm:$0xff] }
  0x36   :  { %193 = vmatprep.subr.bf16.mxu0 %v144_v39  ;;  %727 = vmatprep.subr.bf16.mxu1 %v144_v39  ;;  %v81_v39 = vpack.c.bf16 %v55_v38, %v54_v37  ;;  %v65_v52 = vld [vmem:[#allocation2 + $0xa8] sm:$0xff]  ;;  %v85_v53 = vpack.c.bf16 %v63_v50, %v62_v49  ;;  %v67_v56 = vld [vmem:[#allocation2 + $0xb8] sm:$0xff]  ;;  %v890_v62 = vld [vmem:[%s1007_s2] sm:$0x7]  ;;  %s818_s2 = smov [#allocation7]  }
  0x37   :  { %s636_s26 = sshll.u32 %s818_s2, 4  ;;  %s637_s26 = int_to_ptr.vmem [resolvable:$true] %s636_s26 }
  0x38   :  { %s785_s27 = scalar_lea.vmem %s637_s26, 12288  ;;  %p790_p11 = scmp.lt.s32.totalorder %s637_s26, %s637_s26 }
  0x39   :  { %194 = vmatpush1.bf16.msra.mxu0 %v143_v44  ;;  %735 = vmatpush1.bf16.msra.mxu1 %v143_v44  ;;  %v59_v44 = vld [vmem:[#allocation2 + $0x78] sm:$0xff]  ;;  %p786_p10 = scmp.ne.s32.totalorder %s637_s26, %s785_s27  ;;  %p791_p12 = scmp.lt.s32.totalorder %s785_s27, %s785_s27 }
  0x3a   :  { %195 = vmatprep.subr.bf16.mxu0 %v141_v45  ;;  %728 = vmatprep.subr.bf16.mxu1 %v141_v45  ;;  %v60_v45 = vld [vmem:[#allocation2 + $0x80] sm:$0xff]  ;;  %v83_v47 = vpack.c.bf16 %v59_v44, %v58_v43 }
  0x3b   :  { %v84_v48 = vpack.c.bf16 %v61_v46, %v60_v45  ;;  %p792_p13 = por %p791_p12, %p790_p11 }
  0x3d   :  { %196 = vmatpush1.bf16.msra.mxu0 %v140_v51  ;;  %736 = vmatpush1.bf16.msra.mxu1 %v140_v51  ;;  %v64_v51 = vld [vmem:[#allocation2 + $0xa0] sm:$0xff]  ;;  %p793_p0 = pnand %p792_p13, %p786_p10 }
  0x3e   :  { %673 = vmatprep.subr.bf16.mxu1 %v163_v55  ;;  %v86_v54 = vpack.c.bf16 %v65_v52, %v64_v51 }
  0x40   :  { %214 = vmatmul.mubr.bf16.vlgmr.msra.gmra.mxu0 %v850_v58  ;;  %334 = vmatmul.mubr.bf16.vlgmr.msra.gmra.mxu1 %v852_v59 }
  0x41   :  { %674 = vmatpush3.bf16.msra.mxu1 %v163_v55  ;;  %223 = vmatprep.mubr.bf16.mxu0 %v817_v0  ;;  %v66_v55 = vld [vmem:[#allocation2 + $0xb0] sm:$0xff] }
  0x42   :  { %675 = vmatprep.subr.bf16.mxu1 %v160_v60  ;;  %343 = vmatprep.mubr.bf16.mxu1 %v817_v0  ;;  %v87_v57 = vpack.c.bf16 %v67_v56, %v66_v55 }
  0x45   :  { %676 = vmatpush3.bf16.msra.mxu1 %v160_v60 }
  0x46   :  { %677 = vmatprep.subr.bf16.mxu1 %v157_v4 }
  0x48   :  { %224 = vmatmul.mubr.bf16.gmra.mxu0 %v77_v7  ;;  %344 = vmatmul.mubr.bf16.gmra.mxu1 %v858_v8 }
  0x49   :  { %678 = vmatpush3.bf16.msra.mxu1 %v157_v4  ;;  %233 = vmatprep.mubr.bf16.mxu0 %v817_v0 }
  0x4a   :  { %679 = vmatprep.subr.bf16.mxu1 %v154_v9  ;;  %353 = vmatprep.mubr.bf16.mxu1 %v817_v0 }
  0x4d   :  { %680 = vmatpush3.bf16.msra.mxu1 %v154_v9 }
  0x4e   :  { %681 = vmatprep.subr.bf16.mxu1 %v151_v16 }
  0x50   :  { %234 = vmatmul.mubr.bf16.gmra.mxu0 %v78_v19  ;;  %354 = vmatmul.mubr.bf16.gmra.mxu1 %v863_v20 }
  0x51   :  { %682 = vmatpush3.bf16.msra.mxu1 %v151_v16  ;;  %243 = vmatprep.mubr.bf16.mxu0 %v817_v0 }
  0x52   :  { %683 = vmatprep.subr.bf16.mxu1 %v148_v21  ;;  %363 = vmatprep.mubr.bf16.mxu1 %v817_v0 }
  0x55   :  { %684 = vmatpush3.bf16.msra.mxu1 %v148_v21 }
  0x56   :  { %685 = vmatprep.subr.bf16.mxu1 %v145_v28 }
  0x58   :  { %244 = vmatmul.mubr.bf16.gmra.mxu0 %v79_v31  ;;  %364 = vmatmul.mubr.bf16.gmra.mxu1 %v868_v32 }
  0x59   :  { %686 = vmatpush3.bf16.msra.mxu1 %v145_v28  ;;  %253 = vmatprep.mubr.bf16.mxu0 %v817_v0 }
  0x5a   :  { %687 = vmatprep.subr.bf16.mxu1 %v142_v33  ;;  %689 = vmatprep.mubr.bf16.mxu1 %v850_v58  ;;  %v166_v58 = vlaneseq }
  0x5c   :  { %v884_v60 = vshrl.u32 %v166_v58, 7 }
  0x5d   :  { %688 = vmatpush3.bf16.msra.mxu1 %v142_v33 }
  0x5e   :  { %v168_v61 = vsub.s32 0, %v884_v60 }
  0x60   :  { %254 = vmatmul.mubr.bf16.gmra.mxu0 %v80_v36  ;;  %690 = vmatmul.mubr.bf16.vlgmr.msra.gmra.mxu1 %v77_v7  ;;  %v894_v63 = vrot.slane %v890_v62, %v168_v61 }
  0x61   :  { %263 = vmatprep.mubr.bf16.mxu0 %v817_v0  ;;  %693 = vmatprep.mubr.bf16.mxu1 %v78_v19 }
  0x68   :  { %264 = vmatmul.mubr.bf16.gmra.mxu0 %v81_v39  ;;  %694 = vmatmul.mubr.bf16.gmra.mxu1 %v79_v31 }
  0x69   :  { %273 = vmatprep.mubr.bf16.mxu0 %v817_v0  ;;  %697 = vmatprep.mubr.bf16.mxu1 %v80_v36 }
  0x70   :  { %274 = vmatmul.mubr.bf16.gmra.mxu0 %v82_v42  ;;  %698 = vmatmul.mubr.bf16.gmra.mxu1 %v81_v39 }
  0x71   :  { %283 = vmatprep.mubr.bf16.mxu0 %v817_v0  ;;  %701 = vmatprep.mubr.bf16.mxu1 %v82_v42 }
  0x78   :  { %284 = vmatmul.mubr.bf16.gmra.mxu0 %v83_v47  ;;  %702 = vmatmul.mubr.bf16.gmra.mxu1 %v83_v47 }
  0x79   :  { %293 = vmatprep.mubr.bf16.mxu0 %v817_v0  ;;  %705 = vmatprep.mubr.bf16.mxu1 %v84_v48 }
  0x80   :  { %294 = vmatmul.mubr.bf16.gmra.mxu0 %v84_v48  ;;  %706 = vmatmul.mubr.bf16.gmra.mxu1 %v85_v53 }
  0x81   :  { %303 = vmatprep.mubr.bf16.mxu0 %v817_v0  ;;  %709 = vmatprep.mubr.bf16.mxu1 %v86_v54 }
  0x88   :  { %304 = vmatmul.mubr.bf16.gmra.mxu0 %v85_v53  ;;  %710 = vmatmul.mubr.bf16.gmra.mxu1 %v87_v57  ;;  %v176_v53 = vsub.s32 2, %v884_v60 }
  0x89   :  { %313 = vmatprep.mubr.bf16.mxu0 %v817_v0  ;;  %713 = vmatprep.mubr.bf16.mxu1 %v852_v59  ;;  %v172_v59 = vsub.s32 1, %v884_v60 }
  0x90   :  { %314 = vmatmul.mubr.bf16.gmra.mxu0 %v86_v54  ;;  %714 = vmatmul.mubr.bf16.gmra.mxu1 %v858_v8 }
  0x91   :  { %323 = vmatprep.mubr.bf16.mxu0 %v817_v0  ;;  %717 = vmatprep.mubr.bf16.mxu1 %v863_v20  ;;  %v897_v0 = vrot.slane %v890_v62, %v172_v59 }
  0x98   :  { %324 = vmatmul.mubr.bf16.gmra.mxu0 %v87_v57  ;;  %718 = vmatmul.mubr.bf16.gmra.mxu1 %v868_v32 }
 0x100   :  { %v215_v1 = vpop.f32.mrf.mxu0  ;;  %v335_v2 = vpop.f32.mrf.mxu1 }
 0x101   :  { %v216_v3 = vadd.f32 %v215_v1, %v894_v63  ;;  %v336_v4 = vadd.f32 %v335_v2, %v894_v63  ;;  %v931_v2 = vrot.slane %v890_v62, %v176_v53 }
 0x102   :  { %v217_v5 = vpop.f32.mrf.mxu0  ;;  %v337_v6 = vpop.f32.mrf.mxu1 }
 0x103   :  { %535 = vst [vmem:[#allocation7] sm:$0xff] %v216_v3  ;;  %607 = vst [vmem:[#allocation7 + $0x240] sm:$0xff] %v336_v4  ;;  %v218_v7 = vadd.f32 %v217_v5, %v897_v0  ;;  %v338_v8 = vadd.f32 %v337_v6, %v897_v0 }
 0x104   :  { %v219_v9 = vpop.f32.mrf.mxu0  ;;  %v339_v10 = vpop.f32.mrf.mxu1 }
 0x105   :  { %536 = vst [vmem:[#allocation7 + $0x8] sm:$0xff] %v218_v7  ;;  %608 = vst [vmem:[#allocation7 + $0x248] sm:$0xff] %v338_v8  ;;  %v220_v11 = vadd.f32 %v219_v9, %v894_v63  ;;  %v340_v12 = vadd.f32 %v339_v10, %v894_v63 }
 0x106   :  { %v221_v13 = vpop.f32.mrf.mxu0  ;;  %v341_v14 = vpop.f32.mrf.mxu1 }
 0x107   :  { %538 = vst [vmem:[#allocation7 + $0x18] sm:$0xff] %v220_v11  ;;  %610 = vst [vmem:[#allocation7 + $0x258] sm:$0xff] %v340_v12  ;;  %v222_v15 = vadd.f32 %v221_v13, %v897_v0  ;;  %v342_v16 = vadd.f32 %v341_v14, %v897_v0 }
 0x108   :  { %v225_v17 = vpop.f32.mrf.mxu0  ;;  %v345_v18 = vpop.f32.mrf.mxu1 }
 0x109   :  { %539 = vst [vmem:[#allocation7 + $0x20] sm:$0xff] %v222_v15  ;;  %611 = vst [vmem:[#allocation7 + $0x260] sm:$0xff] %v342_v16  ;;  %v226_v19 = vadd.f32 %v225_v17, %v894_v63  ;;  %v346_v20 = vadd.f32 %v345_v18, %v894_v63 }
 0x10a   :  { %v227_v21 = vpop.f32.mrf.mxu0  ;;  %v347_v22 = vpop.f32.mrf.mxu1 }
 0x10b   :  { %541 = vst [vmem:[#allocation7 + $0x30] sm:$0xff] %v226_v19  ;;  %613 = vst [vmem:[#allocation7 + $0x270] sm:$0xff] %v346_v20  ;;  %v228_v23 = vadd.f32 %v227_v21, %v897_v0  ;;  %v348_v24 = vadd.f32 %v347_v22, %v897_v0 }
 0x10c   :  { %v229_v25 = vpop.f32.mrf.mxu0  ;;  %v349_v26 = vpop.f32.mrf.mxu1 }
 0x10d   :  { %542 = vst [vmem:[#allocation7 + $0x38] sm:$0xff] %v228_v23  ;;  %614 = vst [vmem:[#allocation7 + $0x278] sm:$0xff] %v348_v24  ;;  %v230_v27 = vadd.f32 %v229_v25, %v894_v63  ;;  %v350_v28 = vadd.f32 %v349_v26, %v894_v63 }
 0x10e   :  { %v231_v29 = vpop.f32.mrf.mxu0  ;;  %v351_v30 = vpop.f32.mrf.mxu1 }
 0x10f   :  { %544 = vst [vmem:[#allocation7 + $0x48] sm:$0xff] %v230_v27  ;;  %616 = vst [vmem:[#allocation7 + $0x288] sm:$0xff] %v350_v28  ;;  %v232_v31 = vadd.f32 %v231_v29, %v897_v0  ;;  %v352_v32 = vadd.f32 %v351_v30, %v897_v0 }
 0x110   :  { %v235_v33 = vpop.f32.mrf.mxu0  ;;  %v355_v34 = vpop.f32.mrf.mxu1 }
 0x111   :  { %545 = vst [vmem:[#allocation7 + $0x50] sm:$0xff] %v232_v31  ;;  %617 = vst [vmem:[#allocation7 + $0x290] sm:$0xff] %v352_v32  ;;  %v236_v35 = vadd.f32 %v235_v33, %v894_v63  ;;  %v356_v36 = vadd.f32 %v355_v34, %v894_v63 }
 0x112   :  { %v237_v37 = vpop.f32.mrf.mxu0  ;;  %v357_v38 = vpop.f32.mrf.mxu1 }
 0x113   :  { %547 = vst [vmem:[#allocation7 + $0x60] sm:$0xff] %v236_v35  ;;  %619 = vst [vmem:[#allocation7 + $0x2a0] sm:$0xff] %v356_v36  ;;  %v238_v39 = vadd.f32 %v237_v37, %v897_v0  ;;  %v358_v40 = vadd.f32 %v357_v38, %v897_v0 }
 0x114   :  { %v239_v41 = vpop.f32.mrf.mxu0  ;;  %v359_v42 = vpop.f32.mrf.mxu1 }
 0x115   :  { %548 = vst [vmem:[#allocation7 + $0x68] sm:$0xff] %v238_v39  ;;  %620 = vst [vmem:[#allocation7 + $0x2a8] sm:$0xff] %v358_v40  ;;  %v240_v43 = vadd.f32 %v239_v41, %v894_v63  ;;  %v360_v44 = vadd.f32 %v359_v42, %v894_v63 }
 0x116   :  { %v241_v45 = vpop.f32.mrf.mxu0  ;;  %v361_v46 = vpop.f32.mrf.mxu1 }
 0x117   :  { %550 = vst [vmem:[#allocation7 + $0x78] sm:$0xff] %v240_v43  ;;  %622 = vst [vmem:[#allocation7 + $0x2b8] sm:$0xff] %v360_v44  ;;  %v242_v47 = vadd.f32 %v241_v45, %v897_v0  ;;  %v362_v48 = vadd.f32 %v361_v46, %v897_v0 }
 0x118   :  { %v245_v49 = vpop.f32.mrf.mxu0  ;;  %v365_v50 = vpop.f32.mrf.mxu1 }
 0x119   :  { %551 = vst [vmem:[#allocation7 + $0x80] sm:$0xff] %v242_v47  ;;  %623 = vst [vmem:[#allocation7 + $0x2c0] sm:$0xff] %v362_v48  ;;  %v246_v51 = vadd.f32 %v245_v49, %v894_v63  ;;  %v366_v52 = vadd.f32 %v365_v50, %v894_v63 }
 0x11a   :  { %v247_v54 = vpop.f32.mrf.mxu0  ;;  %v367_v55 = vpop.f32.mrf.mxu1 }
 0x11b   :  { %553 = vst [vmem:[#allocation7 + $0x90] sm:$0xff] %v246_v51  ;;  %625 = vst [vmem:[#allocation7 + $0x2d0] sm:$0xff] %v366_v52  ;;  %v248_v56 = vadd.f32 %v247_v54, %v897_v0  ;;  %v368_v57 = vadd.f32 %v367_v55, %v897_v0 }
 0x11c   :  { %v249_v58 = vpop.f32.mrf.mxu0  ;;  %v369_v61 = vpop.f32.mrf.mxu1 }
 0x11d   :  { %554 = vst [vmem:[#allocation7 + $0x98] sm:$0xff] %v248_v56  ;;  %626 = vst [vmem:[#allocation7 + $0x2d8] sm:$0xff] %v368_v57  ;;  %v250_v59 = vadd.f32 %v249_v58, %v894_v63  ;;  %v370_v1 = vadd.f32 %v369_v61, %v894_v63 }
 0x11e   :  { %v251_v60 = vpop.f32.mrf.mxu0  ;;  %v371_v3 = vpop.f32.mrf.mxu1 }
 0x11f   :  { %556 = vst [vmem:[#allocation7 + $0xa8] sm:$0xff] %v250_v59  ;;  %628 = vst [vmem:[#allocation7 + $0x2e8] sm:$0xff] %v370_v1  ;;  %v252_v4 = vadd.f32 %v251_v60, %v897_v0  ;;  %v372_v5 = vadd.f32 %v371_v3, %v897_v0 }
 0x120   :  { %v255_v6 = vpop.f32.mrf.mxu0  ;;  %v691_v7 = vpop.f32.mrf.mxu1 }
 0x121   :  { %557 = vst [vmem:[#allocation7 + $0xb0] sm:$0xff] %v252_v4  ;;  %629 = vst [vmem:[#allocation7 + $0x2f0] sm:$0xff] %v372_v5  ;;  %v256_v8 = vadd.f32 %v255_v6, %v894_v63  ;;  %v417_v9 = vadd.f32 %v691_v7, %v931_v2 }
 0x122   :  { %v257_v10 = vpop.f32.mrf.mxu0  ;;  %v408_v11 = vpop.f32.mrf.mxu1 }
 0x123   :  { %559 = vst [vmem:[#allocation7 + $0xc0] sm:$0xff] %v256_v8  ;;  %543 = vst [vmem:[#allocation7 + $0x40] sm:$0xff] %v417_v9  ;;  %v258_v62 = vadd.f32 %v257_v10, %v897_v0  ;;  %v409_v12 = vadd.f32 %v408_v11, %v931_v2 }
 0x124   :  { %v259_v13 = vpop.f32.mrf.mxu0  ;;  %v692_v14 = vpop.f32.mrf.mxu1 }
 0x125   :  { %560 = vst [vmem:[#allocation7 + $0xc8] sm:$0xff] %v258_v62  ;;  %537 = vst [vmem:[#allocation7 + $0x10] sm:$0xff] %v409_v12  ;;  %v260_v15 = vadd.f32 %v259_v13, %v894_v63  ;;  %v420_v16 = vadd.f32 %v692_v14, %v931_v2 }
 0x126   :  { %v261_v17 = vpop.f32.mrf.mxu0  ;;  %v411_v18 = vpop.f32.mrf.mxu1 }
 0x127   :  { %562 = vst [vmem:[#allocation7 + $0xd8] sm:$0xff] %v260_v15  ;;  %546 = vst [vmem:[#allocation7 + $0x58] sm:$0xff] %v420_v16  ;;  %v262_v19 = vadd.f32 %v261_v17, %v897_v0  ;;  %v412_v20 = vadd.f32 %v411_v18, %v931_v2 }
 0x128   :  { %v265_v21 = vpop.f32.mrf.mxu0  ;;  %v695_v22 = vpop.f32.mrf.mxu1 }
 0x129   :  { %563 = vst [vmem:[#allocation7 + $0xe0] sm:$0xff] %v262_v19  ;;  %540 = vst [vmem:[#allocation7 + $0x28] sm:$0xff] %v412_v20  ;;  %v266_v23 = vadd.f32 %v265_v21, %v894_v63  ;;  %v433_v24 = vadd.f32 %v695_v22, %v931_v2 }
 0x12a   :  { %v267_v25 = vpop.f32.mrf.mxu0  ;;  %v424_v26 = vpop.f32.mrf.mxu1 }
 0x12b   :  { %565 = vst [vmem:[#allocation7 + $0xf0] sm:$0xff] %v266_v23  ;;  %555 = vst [vmem:[#allocation7 + $0xa0] sm:$0xff] %v433_v24  ;;  %v268_v27 = vadd.f32 %v267_v25, %v897_v0  ;;  %v425_v28 = vadd.f32 %v424_v26, %v931_v2 }
 0x12c   :  { %v269_v29 = vpop.f32.mrf.mxu0  ;;  %v696_v30 = vpop.f32.mrf.mxu1 }
 0x12d   :  { %566 = vst [vmem:[#allocation7 + $0xf8] sm:$0xff] %v268_v27  ;;  %549 = vst [vmem:[#allocation7 + $0x70] sm:$0xff] %v425_v28  ;;  %v270_v31 = vadd.f32 %v269_v29, %v894_v63  ;;  %v436_v32 = vadd.f32 %v696_v30, %v931_v2 }
 0x12e   :  { %v271_v33 = vpop.f32.mrf.mxu0  ;;  %v427_v34 = vpop.f32.mrf.mxu1 }
 0x12f   :  { %568 = vst [vmem:[#allocation7 + $0x108] sm:$0xff] %v270_v31  ;;  %558 = vst [vmem:[#allocation7 + $0xb8] sm:$0xff] %v436_v32  ;;  %v272_v35 = vadd.f32 %v271_v33, %v897_v0  ;;  %v428_v36 = vadd.f32 %v427_v34, %v931_v2 }
 0x130   :  { %v275_v37 = vpop.f32.mrf.mxu0  ;;  %v699_v38 = vpop.f32.mrf.mxu1 }
 0x131   :  { %569 = vst [vmem:[#allocation7 + $0x110] sm:$0xff] %v272_v35  ;;  %552 = vst [vmem:[#allocation7 + $0x88] sm:$0xff] %v428_v36  ;;  %v276_v39 = vadd.f32 %v275_v37, %v894_v63  ;;  %v449_v40 = vadd.f32 %v699_v38, %v931_v2 }
 0x132   :  { %v277_v41 = vpop.f32.mrf.mxu0  ;;  %v440_v42 = vpop.f32.mrf.mxu1 }
 0x133   :  { %571 = vst [vmem:[#allocation7 + $0x120] sm:$0xff] %v276_v39  ;;  %567 = vst [vmem:[#allocation7 + $0x100] sm:$0xff] %v449_v40  ;;  %v278_v43 = vadd.f32 %v277_v41, %v897_v0  ;;  %v441_v44 = vadd.f32 %v440_v42, %v931_v2 }
 0x134   :  { %v279_v45 = vpop.f32.mrf.mxu0  ;;  %v700_v46 = vpop.f32.mrf.mxu1 }
 0x135   :  { %572 = vst [vmem:[#allocation7 + $0x128] sm:$0xff] %v278_v43  ;;  %561 = vst [vmem:[#allocation7 + $0xd0] sm:$0xff] %v441_v44  ;;  %v280_v47 = vadd.f32 %v279_v45, %v894_v63  ;;  %v452_v48 = vadd.f32 %v700_v46, %v931_v2 }
 0x136   :  { %v281_v49 = vpop.f32.mrf.mxu0  ;;  %v443_v50 = vpop.f32.mrf.mxu1 }
 0x137   :  { %574 = vst [vmem:[#allocation7 + $0x138] sm:$0xff] %v280_v47  ;;  %570 = vst [vmem:[#allocation7 + $0x118] sm:$0xff] %v452_v48  ;;  %v282_v51 = vadd.f32 %v281_v49, %v897_v0  ;;  %v444_v52 = vadd.f32 %v443_v50, %v931_v2 }
 0x138   :  { %v285_v53 = vpop.f32.mrf.mxu0  ;;  %v703_v54 = vpop.f32.mrf.mxu1 }
 0x139   :  { %575 = vst [vmem:[#allocation7 + $0x140] sm:$0xff] %v282_v51  ;;  %564 = vst [vmem:[#allocation7 + $0xe8] sm:$0xff] %v444_v52  ;;  %v286_v55 = vadd.f32 %v285_v53, %v894_v63  ;;  %v465_v56 = vadd.f32 %v703_v54, %v931_v2 }
 0x13a   :  { %v287_v57 = vpop.f32.mrf.mxu0  ;;  %v456_v58 = vpop.f32.mrf.mxu1 }
 0x13b   :  { %577 = vst [vmem:[#allocation7 + $0x150] sm:$0xff] %v286_v55  ;;  %579 = vst [vmem:[#allocation7 + $0x160] sm:$0xff] %v465_v56  ;;  %v288_v61 = vadd.f32 %v287_v57, %v897_v0  ;;  %v457_v59 = vadd.f32 %v456_v58, %v931_v2 }
 0x13c   :  { %v289_v1 = vpop.f32.mrf.mxu0  ;;  %v704_v60 = vpop.f32.mrf.mxu1 }
 0x13d   :  { %578 = vst [vmem:[#allocation7 + $0x158] sm:$0xff] %v288_v61  ;;  %573 = vst [vmem:[#allocation7 + $0x130] sm:$0xff] %v457_v59  ;;  %v290_v3 = vadd.f32 %v289_v1, %v894_v63  ;;  %v468_v4 = vadd.f32 %v704_v60, %v931_v2 }
 0x13e   :  { %v291_v5 = vpop.f32.mrf.mxu0  ;;  %v459_v6 = vpop.f32.mrf.mxu1 }
 0x13f   :  { %580 = vst [vmem:[#allocation7 + $0x168] sm:$0xff] %v290_v3  ;;  %582 = vst [vmem:[#allocation7 + $0x178] sm:$0xff] %v468_v4  ;;  %v292_v7 = vadd.f32 %v291_v5, %v897_v0  ;;  %v460_v8 = vadd.f32 %v459_v6, %v931_v2 }
 0x140   :  { %v295_v9 = vpop.f32.mrf.mxu0  ;;  %v707_v10 = vpop.f32.mrf.mxu1 }
 0x141   :  { %581 = vst [vmem:[#allocation7 + $0x170] sm:$0xff] %v292_v7  ;;  %576 = vst [vmem:[#allocation7 + $0x148] sm:$0xff] %v460_v8  ;;  %v296_v11 = vadd.f32 %v295_v9, %v894_v63  ;;  %v481_v62 = vadd.f32 %v707_v10, %v931_v2 }
 0x142   :  { %v297_v12 = vpop.f32.mrf.mxu0  ;;  %v472_v13 = vpop.f32.mrf.mxu1 }
 0x143   :  { %583 = vst [vmem:[#allocation7 + $0x180] sm:$0xff] %v296_v11  ;;  %591 = vst [vmem:[#allocation7 + $0x1c0] sm:$0xff] %v481_v62  ;;  %v298_v14 = vadd.f32 %v297_v12, %v897_v0  ;;  %v473_v15 = vadd.f32 %v472_v13, %v931_v2 }
 0x144   :  { %v299_v16 = vpop.f32.mrf.mxu0  ;;  %v708_v17 = vpop.f32.mrf.mxu1 }
 0x145   :  { %584 = vst [vmem:[#allocation7 + $0x188] sm:$0xff] %v298_v14  ;;  %585 = vst [vmem:[#allocation7 + $0x190] sm:$0xff] %v473_v15  ;;  %v300_v18 = vadd.f32 %v299_v16, %v894_v63  ;;  %v484_v19 = vadd.f32 %v708_v17, %v931_v2 }
 0x146   :  { %v301_v20 = vpop.f32.mrf.mxu0  ;;  %v475_v21 = vpop.f32.mrf.mxu1 }
 0x147   :  { %586 = vst [vmem:[#allocation7 + $0x198] sm:$0xff] %v300_v18  ;;  %594 = vst [vmem:[#allocation7 + $0x1d8] sm:$0xff] %v484_v19  ;;  %v302_v22 = vadd.f32 %v301_v20, %v897_v0  ;;  %v476_v23 = vadd.f32 %v475_v21, %v931_v2 }
 0x148   :  { %v305_v24 = vpop.f32.mrf.mxu0  ;;  %v711_v25 = vpop.f32.mrf.mxu1 }
 0x149   :  { %587 = vst [vmem:[#allocation7 + $0x1a0] sm:$0xff] %v302_v22  ;;  %588 = vst [vmem:[#allocation7 + $0x1a8] sm:$0xff] %v476_v23  ;;  %v306_v26 = vadd.f32 %v305_v24, %v894_v63  ;;  %v497_v27 = vadd.f32 %v711_v25, %v931_v2 }
 0x14a   :  { %v307_v28 = vpop.f32.mrf.mxu0  ;;  %v488_v29 = vpop.f32.mrf.mxu1 }
 0x14b   :  { %589 = vst [vmem:[#allocation7 + $0x1b0] sm:$0xff] %v306_v26  ;;  %603 = vst [vmem:[#allocation7 + $0x220] sm:$0xff] %v497_v27  ;;  %v308_v30 = vadd.f32 %v307_v28, %v897_v0  ;;  %v489_v31 = vadd.f32 %v488_v29, %v931_v2 }
 0x14c   :  { %v309_v32 = vpop.f32.mrf.mxu0  ;;  %v712_v33 = vpop.f32.mrf.mxu1 }
 0x14d   :  { %590 = vst [vmem:[#allocation7 + $0x1b8] sm:$0xff] %v308_v30  ;;  %597 = vst [vmem:[#allocation7 + $0x1f0] sm:$0xff] %v489_v31  ;;  %v310_v34 = vadd.f32 %v309_v32, %v894_v63  ;;  %v500_v35 = vadd.f32 %v712_v33, %v931_v2 }
 0x14e   :  { %v311_v36 = vpop.f32.mrf.mxu0  ;;  %v491_v37 = vpop.f32.mrf.mxu1 }
 0x14f   :  { %592 = vst [vmem:[#allocation7 + $0x1c8] sm:$0xff] %v310_v34  ;;  %606 = vst [vmem:[#allocation7 + $0x238] sm:$0xff] %v500_v35  ;;  %v312_v38 = vadd.f32 %v311_v36, %v897_v0  ;;  %v492_v39 = vadd.f32 %v491_v37, %v931_v2 }
 0x150   :  { %v315_v40 = vpop.f32.mrf.mxu0  ;;  %v715_v41 = vpop.f32.mrf.mxu1 }
 0x151   :  { %593 = vst [vmem:[#allocation7 + $0x1d0] sm:$0xff] %v312_v38  ;;  %600 = vst [vmem:[#allocation7 + $0x208] sm:$0xff] %v492_v39  ;;  %v316_v42 = vadd.f32 %v315_v40, %v894_v63  ;;  %v513_v43 = vadd.f32 %v715_v41, %v931_v2 }
 0x152   :  { %v317_v44 = vpop.f32.mrf.mxu0  ;;  %v504_v45 = vpop.f32.mrf.mxu1 }
 0x153   :  { %595 = vst [vmem:[#allocation7 + $0x1e0] sm:$0xff] %v316_v42  ;;  %615 = vst [vmem:[#allocation7 + $0x280] sm:$0xff] %v513_v43  ;;  %v318_v46 = vadd.f32 %v317_v44, %v897_v0  ;;  %v505_v47 = vadd.f32 %v504_v45, %v931_v2 }
 0x154   :  { %v319_v48 = vpop.f32.mrf.mxu0  ;;  %v716_v49 = vpop.f32.mrf.mxu1 }
 0x155   :  { %596 = vst [vmem:[#allocation7 + $0x1e8] sm:$0xff] %v318_v46  ;;  %609 = vst [vmem:[#allocation7 + $0x250] sm:$0xff] %v505_v47  ;;  %v320_v50 = vadd.f32 %v319_v48, %v894_v63  ;;  %v516_v51 = vadd.f32 %v716_v49, %v931_v2 }
 0x156   :  { %v321_v52 = vpop.f32.mrf.mxu0  ;;  %v507_v53 = vpop.f32.mrf.mxu1 }
 0x157   :  { %598 = vst [vmem:[#allocation7 + $0x1f8] sm:$0xff] %v320_v50  ;;  %618 = vst [vmem:[#allocation7 + $0x298] sm:$0xff] %v516_v51  ;;  %v322_v54 = vadd.f32 %v321_v52, %v897_v0  ;;  %v508_v55 = vadd.f32 %v507_v53, %v931_v2 }
 0x158   :  { %v325_v56 = vpop.f32.mrf.mxu0  ;;  %v719_v57 = vpop.f32.mrf.mxu1 }
 0x159   :  { %599 = vst [vmem:[#allocation7 + $0x200] sm:$0xff] %v322_v54  ;;  %612 = vst [vmem:[#allocation7 + $0x268] sm:$0xff] %v508_v55  ;;  %v326_v58 = vadd.f32 %v325_v56, %v894_v63  ;;  %v529_v61 = vadd.f32 %v719_v57, %v931_v2 }
 0x15a   :  { %v327_v59 = vpop.f32.mrf.mxu0  ;;  %v520_v1 = vpop.f32.mrf.mxu1 }
 0x15b   :  { %601 = vst [vmem:[#allocation7 + $0x210] sm:$0xff] %v326_v58  ;;  %627 = vst [vmem:[#allocation7 + $0x2e0] sm:$0xff] %v529_v61  ;;  %v328_v60 = vadd.f32 %v327_v59, %v897_v0  ;;  %v521_v3 = vadd.f32 %v520_v1, %v931_v2 }
 0x15c   :  { %v329_v4 = vpop.f32.mrf.mxu0  ;;  %v720_v5 = vpop.f32.mrf.mxu1 }
 0x15d   :  { %602 = vst [vmem:[#allocation7 + $0x218] sm:$0xff] %v328_v60  ;;  %621 = vst [vmem:[#allocation7 + $0x2b0] sm:$0xff] %v521_v3  ;;  %v330_v6 = vadd.f32 %v329_v4, %v894_v63  ;;  %v532_v7 = vadd.f32 %v720_v5, %v931_v2 }
 0x15e   :  { %v331_v8 = vpop.f32.mrf.mxu0  ;;  %v523_v9 = vpop.f32.mrf.mxu1 }
 0x15f   :  { %604 = vst [vmem:[#allocation7 + $0x228] sm:$0xff] %v330_v6  ;;  %630 = vst [vmem:[#allocation7 + $0x2f8] sm:$0xff] %v532_v7  ;;  %v332_v10 = vadd.f32 %v331_v8, %v897_v0  ;;  %v524_v11 = vadd.f32 %v523_v9, %v931_v2 }
 0x161   :  { %605 = vst [vmem:[#allocation7 + $0x230] sm:$0xff] %v332_v10  ;;  %624 = vst [vmem:[#allocation7 + $0x2c8] sm:$0xff] %v524_v11 }
 0x162   :  { %796 = shalt.err (!%p793_p0)
}
 0x163   :  { %642 = dma.vmem_to_hbm [thread:$0]  %s637_s26, 12288, %s1008_s3, [#allocation4], %s815_s22, %s815_s22, %s816_s23  }
 0x164   :  { %809 = dma.done.wait [#allocation4], 12288  }
 0x165   :  { %810 = vsyncadd [#allocation4], 4294955008 }
 0x166   :  { %646 = vsyncpa [#allocation3], 1 }
 0x167   :  { %647 = vsyncpa [#allocation6], 1 }
 0x168   :  { %648 = vsyncpa [#allocation4], 1 }

</bundles_post_ra>
